<compile_context>
chip_gen: v7x
topology: tpu7x:2x2x1
jax: 0.10.0
libtpu: 0.0.40
codegen_flags: <defaults>
</compile_context>

<pallas_src>
import jax
import jax.numpy as jnp
from jax.experimental import pallas as pl
from jax.experimental.pallas import tpu as pltpu

LEAKY_SLOPE = 0.01  # PyTorch nn.LeakyReLU default negative_slope
LAYER_DIMS = [(256, 64), (64, 8), (8, 2), (2, 8), (8, 64), (64, 256)]


def _leaky_relu(h):
    # max(h, 0.01*h) == leaky_relu(h) for slope in (0, 1); one max instead of cmp+select.
    return jnp.maximum(h, LEAKY_SLOPE * h)


def wavetable_ae_kernel(
    x_ref,
    w1_ref, b1_ref, w2_ref, b2_ref, w3_ref, b3_ref,   # encoder
    w4_ref, b4_ref, w5_ref, b5_ref, w6_ref, b6_ref,   # decoder
    out_ref,
):
    # ---- layer 1: 256 -> 64 on the MXU (bf16 operands, f32 accumulation) ----
    x = x_ref[...].astype(jnp.bfloat16)                              # (TB, 256)
    h = jnp.dot(x, w1_ref[...], preferred_element_type=jnp.float32) + b1_ref[...]
    h = _leaky_relu(h)                                               # (TB, 64) f32

    # ---- layer 2: 64 -> 8 off the MXU: VPU multiply + XLU lane-reduce per feature ----
    # w2 is kept in PyTorch (out=8, in=64) layout so row j is a lane-aligned (1,64) vector.
    h = jnp.concatenate(
        [jnp.sum(h * w2_ref[j:j + 1, :], axis=-1, keepdims=True) for j in range(8)],
        axis=-1) + b2_ref[...]                                       # (TB, 8)
    h = _leaky_relu(h)

    # ---- layer 3: 8 -> 2: two lane-reduces ----
    z = jnp.concatenate(
        [jnp.sum(h * w3_ref[j:j + 1, :], axis=-1, keepdims=True) for j in range(2)],
        axis=-1) + b3_ref[...]                                       # (TB, 2)
    # Exact sigmoid; exp goes to the EUP slot which has slack. Tensor is tiny.
    z = 1.0 / (1.0 + jnp.exp(-z))

    # ---- layer 4: 2 -> 8: rank-2 broadcast FMA on the VPU ----
    h = z[:, 0:1] * w4_ref[0:1, :] + z[:, 1:2] * w4_ref[1:2, :] + b4_ref[...]   # (TB, 8)
    h = _leaky_relu(h)

    # ---- layer 5: 8 -> 64: rank-8 broadcast FMA on the VPU ----
    acc = b5_ref[...] + h[:, 0:1] * w5_ref[0:1, :]
    for k in range(1, 8):
        acc = acc + h[:, k:k + 1] * w5_ref[k:k + 1, :]
    h = _leaky_relu(acc)                                             # (TB, 64)

    # ---- layer 6: 64 -> 256 on the MXU (bf16 operands, f32 accumulation) ----
    y = jnp.dot(h.astype(jnp.bfloat16), w6_ref[...],
                preferred_element_type=jnp.float32) + b6_ref[...]
    out_ref[...] = y.astype(out_ref.dtype)                           # lane-dense (TB, 256)


def _round_up(n, m):
    return (n + m - 1) // m * m


def _num_tensorcores():
    """Best-effort TensorCore count (v7x = 2, v5e/v6e = 1). Safe default of 1."""
    try:
        info = pltpu.get_tpu_info()
    except Exception:
        return 1
    for attr in ("num_cores", "num_tensorcores", "tensorcore_count", "cores_per_chip"):
        v = getattr(info, attr, None)
        if isinstance(v, int) and v > 0:
            return v
    return 1


def prepare_operands(params):
    """params: 6 x (w (out,in), b (out,)) in nn.Linear layout -> kernel operands.

    Layers 1,6 : W^T (in,out) in bf16 for the MXU.
    Layers 2,3 : W   (out,in) in f32 -- rows are lane-aligned reduction vectors.
    Layers 4,5 : W^T (in,out) in f32 -- rows are lane-aligned broadcast vectors.
    Biases     : (1, out) f32.
    """
    (w1, b1), (w2, b2), (w3, b3), (w4, b4), (w5, b5), (w6, b6) = params
    f32 = jnp.float32
    return [
        w1.T.astype(jnp.bfloat16), b1.reshape(1, -1).astype(f32),
        w2.astype(f32),            b2.reshape(1, -1).astype(f32),
        w3.astype(f32),            b3.reshape(1, -1).astype(f32),
        w4.T.astype(f32),          b4.reshape(1, -1).astype(f32),
        w5.T.astype(f32),          b5.reshape(1, -1).astype(f32),
        w6.T.astype(jnp.bfloat16), b6.reshape(1, -1).astype(f32),
    ]


def wavetable_ae(x, params, *, tb=2048):
    """x: (B, 256). params: list of 6 (w, b) in PyTorch nn.Linear layout (out,in)/(out,)."""
    B, D = x.shape
    assert D == 256
    x = x.astype(jnp.float32)
    operands = prepare_operands(params)

    # ---- batch tile -------------------------------------------------------------
    # Large tiles amortize the ~0.35 us per-step pipeline overhead and the per-layer
    # MXU result drains.  Clamp to the (8-aligned) batch; only force >= 2 grid steps
    # on multi-TensorCore parts (v7x) where the "parallel" axis can actually shard.
    tb = max(8, min(tb, _round_up(B, 8)))
    if _num_tensorcores() >= 2 and B > 8 and _round_up(B, tb) == tb:
        tb = _round_up(pl.cdiv(B, 2), 8)          # even 2-way split for TC balance
    Bp = _round_up(B, tb)
    if Bp != B:
        x = jnp.pad(x, ((0, Bp - B), (0, 0)))     # zero-pad ragged batch; sliced off below
    grid = (Bp // tb,)

    # ---- VMEM budget: ~1.5x the actual working set (no 32-48 MiB clamp) ----------
    io_bytes = 2 * 2 * tb * 256 * 4                         # double-buffered x/out tiles
    param_bytes = 2 * sum(int(op.size) * op.dtype.itemsize for op in operands)
    act_bytes = tb * (2 * 256 + 2 * 64 + 3 * 8 + 2) * 4     # upper bound on live temporaries
    vmem_limit = int(1.5 * (io_bytes + param_bytes + act_bytes)) + (2 << 20)
    vmem_limit = min(max(vmem_limit, 8 << 20), 48 << 20)

    const_map = lambda i: (0, 0)   # same full block every step -> weights stay resident
    in_specs = [pl.BlockSpec((tb, 256), lambda i: (i, 0))]
    in_specs += [pl.BlockSpec(op.shape, const_map) for op in operands]
    # If the x/out DMA becomes exposed on v5e after the MXU fixes (check bundle dump),
    # bump the x/out specs to pipeline_mode=pl.Buffered(3) (~1 MiB VMEM per direction).

    out = pl.pallas_call(
        wavetable_ae_kernel,
        out_shape=jax.ShapeDtypeStruct((Bp, 256), jnp.float32),
        grid_spec=pltpu.PrefetchScalarGridSpec(
            num_scalar_prefetch=0,
            grid=grid,
            in_specs=in_specs,
            out_specs=pl.BlockSpec((tb, 256), lambda i: (i, 0)),
        ),
        compiler_params=pltpu.CompilerParams(
            dimension_semantics=("parallel",),
            vmem_limit_bytes=vmem_limit,
        ),
    )(x, *operands)
    return out[:B]


def init_params(key):
    """Deterministic synthetic init matching nn.Linear shapes: w (out,in), b (out,)."""
    params = []
    for d_in, d_out in LAYER_DIMS:
        key, kw, kb = jax.random.split(key, 3)
        bound = 1.0 / jnp.sqrt(d_in)
        w = jax.random.uniform(kw, (d_out, d_in), jnp.float32, -bound, bound)
        b = jax.random.uniform(kb, (d_out,), jnp.float32, -bound, bound)
        params.append((w, b))
    return params


def reference_forward(x, params, *, matmul_dtype=jnp.float32):
    """Pure-JAX reference. matmul_dtype=bfloat16 matches the kernel's MXU precision on
    the two 256-wide layers (accumulation stays f32 either way)."""
    (w1, b1), (w2, b2), (w3, b3), (w4, b4), (w5, b5), (w6, b6) = params
    lrelu = lambda t: jnp.maximum(t, LEAKY_SLOPE * t)
    h = lrelu(jnp.dot(x.astype(matmul_dtype), w1.T.astype(matmul_dtype),
                      preferred_element_type=jnp.float32) + b1)
    h = lrelu(h @ w2.T + b2)
    z = 1.0 / (1.0 + jnp.exp(-(h @ w3.T + b3)))
    h = lrelu(z @ w4.T + b4)
    h = lrelu(h @ w5.T + b5)
    return jnp.dot(h.astype(matmul_dtype), w6.T.astype(matmul_dtype),
                   preferred_element_type=jnp.float32) + b6


if __name__ == "__main__":
    key = jax.random.PRNGKey(0)
    key, kx = jax.random.split(key)
    params = init_params(key)

    # Small even batch (tb clamps to 16; single grid step on single-TC parts).
    B = 16
    x = jax.random.normal(kx, (B, 256), jnp.float32)
    out = jax.block_until_ready(wavetable_ae(x, params))
    assert out.shape == (B, 256)

    ref_matched = reference_forward(x, params, matmul_dtype=jnp.bfloat16)
    ref_f32 = reference_forward(x, params)
    # Tight parity vs the precision-matched reference; loose vs full-f32 (bf16 MXU
    # operands on layers 1/6 cannot meet 1e-5 against an f32 reference -- see review).
    assert jnp.allclose(out, ref_matched, atol=1e-3, rtol=1e-3), "mismatch vs matched ref"
    assert jnp.allclose(out, ref_f32, atol=2e-2, rtol=2e-2), "mismatch vs f32 ref"

    # Ragged batch exercises the padding / slicing path.
    x2 = x[:11]
    out2 = jax.block_until_ready(wavetable_ae(x2, params))
    assert out2.shape == (11, 256)
    ref2 = reference_forward(x2, params, matmul_dtype=jnp.bfloat16)
    assert jnp.allclose(out2, ref2, atol=1e-3, rtol=1e-3), "mismatch vs matched ref (B=11)"

    print("KERNEL_OK")
</pallas_src>

<mosaic_0001>
module attributes {stable_mosaic.version = 11 : i64} {
  func.func @wavetable_ae_kernel(%arg0: i32, %arg1: memref<16x256xf32, #tpu.memory_space<vmem>>, %arg2: memref<256x64xbf16, #tpu.memory_space<vmem>>, %arg3: memref<1x64xf32, #tpu.memory_space<vmem>>, %arg4: memref<8x64xf32, #tpu.memory_space<vmem>>, %arg5: memref<1x8xf32, #tpu.memory_space<vmem>>, %arg6: memref<2x8xf32, #tpu.memory_space<vmem>>, %arg7: memref<1x2xf32, #tpu.memory_space<vmem>>, %arg8: memref<2x8xf32, #tpu.memory_space<vmem>>, %arg9: memref<1x8xf32, #tpu.memory_space<vmem>>, %arg10: memref<8x64xf32, #tpu.memory_space<vmem>>, %arg11: memref<1x64xf32, #tpu.memory_space<vmem>>, %arg12: memref<64x256xbf16, #tpu.memory_space<vmem>>, %arg13: memref<1x256xf32, #tpu.memory_space<vmem>>, %arg14: memref<16x256xf32, #tpu.memory_space<vmem>>) attributes {dimension_semantics = [#tpu.dimension_semantics<parallel>], iteration_bounds = array<i64: 1>, scalar_prefetch = 0 : i64, scratch_operands = 0 : i64, tpu.core_type = #tpu.core_type<tc>, window_params = [{transform_indices = @transform_0, window_bounds = array<i64: 16, 256>}, {pipeline_mode = #tpu.pipeline_mode<synchronous>, transform_indices = @transform_1, window_bounds = array<i64: 256, 64>}, {pipeline_mode = #tpu.pipeline_mode<synchronous>, transform_indices = @transform_2, window_bounds = array<i64: 1, 64>}, {pipeline_mode = #tpu.pipeline_mode<synchronous>, transform_indices = @transform_3, window_bounds = array<i64: 8, 64>}, {pipeline_mode = #tpu.pipeline_mode<synchronous>, transform_indices = @transform_4, window_bounds = array<i64: 1, 8>}, {pipeline_mode = #tpu.pipeline_mode<synchronous>, transform_indices = @transform_5, window_bounds = array<i64: 2, 8>}, {pipeline_mode = #tpu.pipeline_mode<synchronous>, transform_indices = @transform_6, window_bounds = array<i64: 1, 2>}, {pipeline_mode = #tpu.pipeline_mode<synchronous>, transform_indices = @transform_7, window_bounds = array<i64: 2, 8>}, {pipeline_mode = #tpu.pipeline_mode<synchronous>, transform_indices = @transform_8, window_bounds = array<i64: 1, 8>}, {pipeline_mode = #tpu.pipeline_mode<synchronous>, transform_indices = @transform_9, window_bounds = array<i64: 8, 64>}, {pipeline_mode = #tpu.pipeline_mode<synchronous>, transform_indices = @transform_10, window_bounds = array<i64: 1, 64>}, {pipeline_mode = #tpu.pipeline_mode<synchronous>, transform_indices = @transform_11, window_bounds = array<i64: 64, 256>}, {pipeline_mode = #tpu.pipeline_mode<synchronous>, transform_indices = @transform_12, window_bounds = array<i64: 1, 256>}, {transform_indices = @transform_13, window_bounds = array<i64: 16, 256>}]} {
    %c0 = arith.constant 0 : index
    %c0_0 = arith.constant 0 : index
    %0 = vector.load %arg1[%c0, %c0_0] : memref<16x256xf32, #tpu.memory_space<vmem>>, vector<16x256xf32>
    %1 = arith.truncf %0 : vector<16x256xf32> to vector<16x256xbf16>
    %c0_1 = arith.constant 0 : index
    %c0_2 = arith.constant 0 : index
    %2 = vector.load %arg2[%c0_1, %c0_2] : memref<256x64xbf16, #tpu.memory_space<vmem>>, vector<256x64xbf16>
    %cst = arith.constant dense<0.000000e+00> : vector<16x64xf32>
    %3 = tpu.matmul %1, %2, %cst {dimension_numbers = #tpu.dot_dimension_numbers<[1], [0], [0], [1], [0, 0, 1, 1], [], []>} : vector<16x256xbf16>, vector<256x64xbf16>, vector<16x64xf32> -> vector<16x64xf32>
    %c0_3 = arith.constant 0 : index
    %c0_4 = arith.constant 0 : index
    %4 = vector.load %arg3[%c0_3, %c0_4] : memref<1x64xf32, #tpu.memory_space<vmem>>, vector<1x64xf32>
    %5 = vector.broadcast %4 : vector<1x64xf32> to vector<16x64xf32>
    %6 = arith.addf %3, %5 : vector<16x64xf32>
    %cst_5 = arith.constant 0.00999999977 : f32
    %7 = vector.broadcast %cst_5 : f32 to vector<16x64xf32>
    %8 = arith.mulf %7, %6 : vector<16x64xf32>
    %9 = arith.maximumf %6, %8 : vector<16x64xf32>
    %c0_6 = arith.constant 0 : index
    %c0_7 = arith.constant 0 : index
    %10 = vector.load %arg4[%c0_6, %c0_7] : memref<8x64xf32, #tpu.memory_space<vmem>>, vector<1x64xf32>
    %11 = vector.broadcast %10 : vector<1x64xf32> to vector<16x64xf32>
    %12 = arith.mulf %9, %11 : vector<16x64xf32>
    %cst_8 = arith.constant dense<0.000000e+00> : vector<16xf32>
    %13 = vector.multi_reduction <add>, %12, %cst_8 [1] : vector<16x64xf32> to vector<16xf32>
    %14 = vector.shape_cast %13 : vector<16xf32> to vector<16x1xf32>
    %c1 = arith.constant 1 : index
    %c0_9 = arith.constant 0 : index
    %15 = vector.load %arg4[%c1, %c0_9] : memref<8x64xf32, #tpu.memory_space<vmem>>, vector<1x64xf32>
    %16 = vector.broadcast %15 : vector<1x64xf32> to vector<16x64xf32>
    %17 = arith.mulf %9, %16 : vector<16x64xf32>
    %cst_10 = arith.constant dense<0.000000e+00> : vector<16xf32>
    %18 = vector.multi_reduction <add>, %17, %cst_10 [1] : vector<16x64xf32> to vector<16xf32>
    %19 = vector.shape_cast %18 : vector<16xf32> to vector<16x1xf32>
    %c2 = arith.constant 2 : index
    %c0_11 = arith.constant 0 : index
    %20 = vector.load %arg4[%c2, %c0_11] : memref<8x64xf32, #tpu.memory_space<vmem>>, vector<1x64xf32>
    %21 = vector.broadcast %20 : vector<1x64xf32> to vector<16x64xf32>
    %22 = arith.mulf %9, %21 : vector<16x64xf32>
    %cst_12 = arith.constant dense<0.000000e+00> : vector<16xf32>
    %23 = vector.multi_reduction <add>, %22, %cst_12 [1] : vector<16x64xf32> to vector<16xf32>
    %24 = vector.shape_cast %23 : vector<16xf32> to vector<16x1xf32>
    %c3 = arith.constant 3 : index
    %c0_13 = arith.constant 0 : index
    %25 = vector.load %arg4[%c3, %c0_13] : memref<8x64xf32, #tpu.memory_space<vmem>>, vector<1x64xf32>
    %26 = vector.broadcast %25 : vector<1x64xf32> to vector<16x64xf32>
    %27 = arith.mulf %9, %26 : vector<16x64xf32>
    %cst_14 = arith.constant dense<0.000000e+00> : vector<16xf32>
    %28 = vector.multi_reduction <add>, %27, %cst_14 [1] : vector<16x64xf32> to vector<16xf32>
    %29 = vector.shape_cast %28 : vector<16xf32> to vector<16x1xf32>
    %c4 = arith.constant 4 : index
    %c0_15 = arith.constant 0 : index
    %30 = vector.load %arg4[%c4, %c0_15] : memref<8x64xf32, #tpu.memory_space<vmem>>, vector<1x64xf32>
    %31 = vector.broadcast %30 : vector<1x64xf32> to vector<16x64xf32>
    %32 = arith.mulf %9, %31 : vector<16x64xf32>
    %cst_16 = arith.constant dense<0.000000e+00> : vector<16xf32>
    %33 = vector.multi_reduction <add>, %32, %cst_16 [1] : vector<16x64xf32> to vector<16xf32>
    %34 = vector.shape_cast %33 : vector<16xf32> to vector<16x1xf32>
    %c5 = arith.constant 5 : index
    %c0_17 = arith.constant 0 : index
    %35 = vector.load %arg4[%c5, %c0_17] : memref<8x64xf32, #tpu.memory_space<vmem>>, vector<1x64xf32>
    %36 = vector.broadcast %35 : vector<1x64xf32> to vector<16x64xf32>
    %37 = arith.mulf %9, %36 : vector<16x64xf32>
    %cst_18 = arith.constant dense<0.000000e+00> : vector<16xf32>
    %38 = vector.multi_reduction <add>, %37, %cst_18 [1] : vector<16x64xf32> to vector<16xf32>
    %39 = vector.shape_cast %38 : vector<16xf32> to vector<16x1xf32>
    %c6 = arith.constant 6 : index
    %c0_19 = arith.constant 0 : index
    %40 = vector.load %arg4[%c6, %c0_19] : memref<8x64xf32, #tpu.memory_space<vmem>>, vector<1x64xf32>
    %41 = vector.broadcast %40 : vector<1x64xf32> to vector<16x64xf32>
    %42 = arith.mulf %9, %41 : vector<16x64xf32>
    %cst_20 = arith.constant dense<0.000000e+00> : vector<16xf32>
    %43 = vector.multi_reduction <add>, %42, %cst_20 [1] : vector<16x64xf32> to vector<16xf32>
    %44 = vector.shape_cast %43 : vector<16xf32> to vector<16x1xf32>
    %c7 = arith.constant 7 : index
    %c0_21 = arith.constant 0 : index
    %45 = vector.load %arg4[%c7, %c0_21] : memref<8x64xf32, #tpu.memory_space<vmem>>, vector<1x64xf32>
    %46 = vector.broadcast %45 : vector<1x64xf32> to vector<16x64xf32>
    %47 = arith.mulf %9, %46 : vector<16x64xf32>
    %cst_22 = arith.constant dense<0.000000e+00> : vector<16xf32>
    %48 = vector.multi_reduction <add>, %47, %cst_22 [1] : vector<16x64xf32> to vector<16xf32>
    %49 = vector.shape_cast %48 : vector<16xf32> to vector<16x1xf32>
    %50 = tpu.concatenate %14, %19, %24, %29, %34, %39, %44, %49 in 1 : vector<16x1xf32>, vector<16x1xf32>, vector<16x1xf32>, vector<16x1xf32>, vector<16x1xf32>, vector<16x1xf32>, vector<16x1xf32>, vector<16x1xf32> -> vector<16x8xf32>
    %c0_23 = arith.constant 0 : index
    %c0_24 = arith.constant 0 : index
    %51 = vector.load %arg5[%c0_23, %c0_24] : memref<1x8xf32, #tpu.memory_space<vmem>>, vector<1x8xf32>
    %52 = vector.broadcast %51 : vector<1x8xf32> to vector<16x8xf32>
    %53 = arith.addf %50, %52 : vector<16x8xf32>
    %cst_25 = arith.constant 0.00999999977 : f32
    %54 = vector.broadcast %cst_25 : f32 to vector<16x8xf32>
    %55 = arith.mulf %54, %53 : vector<16x8xf32>
    %56 = arith.maximumf %53, %55 : vector<16x8xf32>
    %c0_26 = arith.constant 0 : index
    %c0_27 = arith.constant 0 : index
    %57 = vector.load %arg6[%c0_26, %c0_27] : memref<2x8xf32, #tpu.memory_space<vmem>>, vector<1x8xf32>
    %58 = vector.broadcast %57 : vector<1x8xf32> to vector<16x8xf32>
    %59 = arith.mulf %56, %58 : vector<16x8xf32>
    %cst_28 = arith.constant dense<0.000000e+00> : vector<16xf32>
    %60 = vector.multi_reduction <add>, %59, %cst_28 [1] : vector<16x8xf32> to vector<16xf32>
    %61 = vector.shape_cast %60 : vector<16xf32> to vector<16x1xf32>
    %c1_29 = arith.constant 1 : index
    %c0_30 = arith.constant 0 : index
    %62 = vector.load %arg6[%c1_29, %c0_30] : memref<2x8xf32, #tpu.memory_space<vmem>>, vector<1x8xf32>
    %63 = vector.broadcast %62 : vector<1x8xf32> to vector<16x8xf32>
    %64 = arith.mulf %56, %63 : vector<16x8xf32>
    %cst_31 = arith.constant dense<0.000000e+00> : vector<16xf32>
    %65 = vector.multi_reduction <add>, %64, %cst_31 [1] : vector<16x8xf32> to vector<16xf32>
    %66 = vector.shape_cast %65 : vector<16xf32> to vector<16x1xf32>
    %67 = tpu.concatenate %61, %66 in 1 : vector<16x1xf32>, vector<16x1xf32> -> vector<16x2xf32>
    %c0_32 = arith.constant 0 : index
    %c0_33 = arith.constant 0 : index
    %68 = vector.load %arg7[%c0_32, %c0_33] : memref<1x2xf32, #tpu.memory_space<vmem>>, vector<1x2xf32>
    %69 = vector.broadcast %68 : vector<1x2xf32> to vector<16x2xf32>
    %70 = arith.addf %67, %69 : vector<16x2xf32>
    %cst_34 = arith.constant 0.000000e+00 : f32
    %71 = vector.broadcast %cst_34 : f32 to vector<16x2xf32>
    %72 = arith.subf %71, %70 : vector<16x2xf32>
    %73 = math.exp %72 : vector<16x2xf32>
    %cst_35 = arith.constant 1.000000e+00 : f32
    %74 = vector.broadcast %cst_35 : f32 to vector<16x2xf32>
    %75 = arith.addf %74, %73 : vector<16x2xf32>
    %cst_36 = arith.constant 1.000000e+00 : f32
    %76 = vector.broadcast %cst_36 : f32 to vector<16x2xf32>
    %77 = arith.divf %76, %75 : vector<16x2xf32>
    %78 = vector.extract_strided_slice %77 {offsets = [0, 0], sizes = [16, 1], strides = [1, 1]} : vector<16x2xf32> to vector<16x1xf32>
    %c0_37 = arith.constant 0 : index
    %c0_38 = arith.constant 0 : index
    %79 = vector.load %arg8[%c0_37, %c0_38] : memref<2x8xf32, #tpu.memory_space<vmem>>, vector<1x8xf32>
    %80 = vector.broadcast %78 : vector<16x1xf32> to vector<16x8xf32>
    %81 = vector.broadcast %79 : vector<1x8xf32> to vector<16x8xf32>
    %82 = arith.mulf %80, %81 : vector<16x8xf32>
    %83 = vector.extract_strided_slice %77 {offsets = [0, 1], sizes = [16, 1], strides = [1, 1]} : vector<16x2xf32> to vector<16x1xf32>
    %c1_39 = arith.constant 1 : index
    %c0_40 = arith.constant 0 : index
    %84 = vector.load %arg8[%c1_39, %c0_40] : memref<2x8xf32, #tpu.memory_space<vmem>>, vector<1x8xf32>
    %85 = vector.broadcast %83 : vector<16x1xf32> to vector<16x8xf32>
    %86 = vector.broadcast %84 : vector<1x8xf32> to vector<16x8xf32>
    %87 = arith.mulf %85, %86 : vector<16x8xf32>
    %88 = arith.addf %82, %87 : vector<16x8xf32>
    %c0_41 = arith.constant 0 : index
    %c0_42 = arith.constant 0 : index
    %89 = vector.load %arg9[%c0_41, %c0_42] : memref<1x8xf32, #tpu.memory_space<vmem>>, vector<1x8xf32>
    %90 = vector.broadcast %89 : vector<1x8xf32> to vector<16x8xf32>
    %91 = arith.addf %88, %90 : vector<16x8xf32>
    %cst_43 = arith.constant 0.00999999977 : f32
    %92 = vector.broadcast %cst_43 : f32 to vector<16x8xf32>
    %93 = arith.mulf %92, %91 : vector<16x8xf32>
    %94 = arith.maximumf %91, %93 : vector<16x8xf32>
    %c0_44 = arith.constant 0 : index
    %c0_45 = arith.constant 0 : index
    %95 = vector.load %arg11[%c0_44, %c0_45] : memref<1x64xf32, #tpu.memory_space<vmem>>, vector<1x64xf32>
    %96 = vector.extract_strided_slice %94 {offsets = [0, 0], sizes = [16, 1], strides = [1, 1]} : vector<16x8xf32> to vector<16x1xf32>
    %c0_46 = arith.constant 0 : index
    %c0_47 = arith.constant 0 : index
    %97 = vector.load %arg10[%c0_46, %c0_47] : memref<8x64xf32, #tpu.memory_space<vmem>>, vector<1x64xf32>
    %98 = vector.broadcast %96 : vector<16x1xf32> to vector<16x64xf32>
    %99 = vector.broadcast %97 : vector<1x64xf32> to vector<16x64xf32>
    %100 = arith.mulf %98, %99 : vector<16x64xf32>
    %101 = vector.broadcast %95 : vector<1x64xf32> to vector<16x64xf32>
    %102 = arith.addf %101, %100 : vector<16x64xf32>
    %103 = vector.extract_strided_slice %94 {offsets = [0, 1], sizes = [16, 1], strides = [1, 1]} : vector<16x8xf32> to vector<16x1xf32>
    %c1_48 = arith.constant 1 : index
    %c0_49 = arith.constant 0 : index
    %104 = vector.load %arg10[%c1_48, %c0_49] : memref<8x64xf32, #tpu.memory_space<vmem>>, vector<1x64xf32>
    %105 = vector.broadcast %103 : vector<16x1xf32> to vector<16x64xf32>
    %106 = vector.broadcast %104 : vector<1x64xf32> to vector<16x64xf32>
    %107 = arith.mulf %105, %106 : vector<16x64xf32>
    %108 = arith.addf %102, %107 : vector<16x64xf32>
    %109 = vector.extract_strided_slice %94 {offsets = [0, 2], sizes = [16, 1], strides = [1, 1]} : vector<16x8xf32> to vector<16x1xf32>
    %c2_50 = arith.constant 2 : index
    %c0_51 = arith.constant 0 : index
    %110 = vector.load %arg10[%c2_50, %c0_51] : memref<8x64xf32, #tpu.memory_space<vmem>>, vector<1x64xf32>
    %111 = vector.broadcast %109 : vector<16x1xf32> to vector<16x64xf32>
    %112 = vector.broadcast %110 : vector<1x64xf32> to vector<16x64xf32>
    %113 = arith.mulf %111, %112 : vector<16x64xf32>
    %114 = arith.addf %108, %113 : vector<16x64xf32>
    %115 = vector.extract_strided_slice %94 {offsets = [0, 3], sizes = [16, 1], strides = [1, 1]} : vector<16x8xf32> to vector<16x1xf32>
    %c3_52 = arith.constant 3 : index
    %c0_53 = arith.constant 0 : index
    %116 = vector.load %arg10[%c3_52, %c0_53] : memref<8x64xf32, #tpu.memory_space<vmem>>, vector<1x64xf32>
    %117 = vector.broadcast %115 : vector<16x1xf32> to vector<16x64xf32>
    %118 = vector.broadcast %116 : vector<1x64xf32> to vector<16x64xf32>
    %119 = arith.mulf %117, %118 : vector<16x64xf32>
    %120 = arith.addf %114, %119 : vector<16x64xf32>
    %121 = vector.extract_strided_slice %94 {offsets = [0, 4], sizes = [16, 1], strides = [1, 1]} : vector<16x8xf32> to vector<16x1xf32>
    %c4_54 = arith.constant 4 : index
    %c0_55 = arith.constant 0 : index
    %122 = vector.load %arg10[%c4_54, %c0_55] : memref<8x64xf32, #tpu.memory_space<vmem>>, vector<1x64xf32>
    %123 = vector.broadcast %121 : vector<16x1xf32> to vector<16x64xf32>
    %124 = vector.broadcast %122 : vector<1x64xf32> to vector<16x64xf32>
    %125 = arith.mulf %123, %124 : vector<16x64xf32>
    %126 = arith.addf %120, %125 : vector<16x64xf32>
    %127 = vector.extract_strided_slice %94 {offsets = [0, 5], sizes = [16, 1], strides = [1, 1]} : vector<16x8xf32> to vector<16x1xf32>
    %c5_56 = arith.constant 5 : index
    %c0_57 = arith.constant 0 : index
    %128 = vector.load %arg10[%c5_56, %c0_57] : memref<8x64xf32, #tpu.memory_space<vmem>>, vector<1x64xf32>
    %129 = vector.broadcast %127 : vector<16x1xf32> to vector<16x64xf32>
    %130 = vector.broadcast %128 : vector<1x64xf32> to vector<16x64xf32>
    %131 = arith.mulf %129, %130 : vector<16x64xf32>
    %132 = arith.addf %126, %131 : vector<16x64xf32>
    %133 = vector.extract_strided_slice %94 {offsets = [0, 6], sizes = [16, 1], strides = [1, 1]} : vector<16x8xf32> to vector<16x1xf32>
    %c6_58 = arith.constant 6 : index
    %c0_59 = arith.constant 0 : index
    %134 = vector.load %arg10[%c6_58, %c0_59] : memref<8x64xf32, #tpu.memory_space<vmem>>, vector<1x64xf32>
    %135 = vector.broadcast %133 : vector<16x1xf32> to vector<16x64xf32>
    %136 = vector.broadcast %134 : vector<1x64xf32> to vector<16x64xf32>
    %137 = arith.mulf %135, %136 : vector<16x64xf32>
    %138 = arith.addf %132, %137 : vector<16x64xf32>
    %139 = vector.extract_strided_slice %94 {offsets = [0, 7], sizes = [16, 1], strides = [1, 1]} : vector<16x8xf32> to vector<16x1xf32>
    %c7_60 = arith.constant 7 : index
    %c0_61 = arith.constant 0 : index
    %140 = vector.load %arg10[%c7_60, %c0_61] : memref<8x64xf32, #tpu.memory_space<vmem>>, vector<1x64xf32>
    %141 = vector.broadcast %139 : vector<16x1xf32> to vector<16x64xf32>
    %142 = vector.broadcast %140 : vector<1x64xf32> to vector<16x64xf32>
    %143 = arith.mulf %141, %142 : vector<16x64xf32>
    %144 = arith.addf %138, %143 : vector<16x64xf32>
    %cst_62 = arith.constant 0.00999999977 : f32
    %145 = vector.broadcast %cst_62 : f32 to vector<16x64xf32>
    %146 = arith.mulf %145, %144 : vector<16x64xf32>
    %147 = arith.maximumf %144, %146 : vector<16x64xf32>
    %148 = arith.truncf %147 : vector<16x64xf32> to vector<16x64xbf16>
    %c0_63 = arith.constant 0 : index
    %c0_64 = arith.constant 0 : index
    %149 = vector.load %arg12[%c0_63, %c0_64] : memref<64x256xbf16, #tpu.memory_space<vmem>>, vector<64x256xbf16>
    %cst_65 = arith.constant dense<0.000000e+00> : vector<16x256xf32>
    %150 = tpu.matmul %148, %149, %cst_65 {dimension_numbers = #tpu.dot_dimension_numbers<[1], [0], [0], [1], [0, 0, 1, 1], [], []>} : vector<16x64xbf16>, vector<64x256xbf16>, vector<16x256xf32> -> vector<16x256xf32>
    %c0_66 = arith.constant 0 : index
    %c0_67 = arith.constant 0 : index
    %151 = vector.load %arg13[%c0_66, %c0_67] : memref<1x256xf32, #tpu.memory_space<vmem>>, vector<1x256xf32>
    %152 = vector.broadcast %151 : vector<1x256xf32> to vector<16x256xf32>
    %153 = arith.addf %150, %152 : vector<16x256xf32>
    %c0_68 = arith.constant 0 : index
    %c0_69 = arith.constant 0 : index
    %154 = vector.load %arg14[%c0_68, %c0_69] : memref<16x256xf32, #tpu.memory_space<vmem>>, vector<16x256xf32>
    tpu.vector_store %arg14[%c0_68, %c0_69], %153 {strides = array<i32>} : memref<16x256xf32, #tpu.memory_space<vmem>>, vector<16x256xf32>,
    return
  }
  func.func @transform_0(%arg0: i32) -> (i32, i32) {
    %c0_i32 = arith.constant 0 : i32
    %c0_i32_0 = arith.constant 0 : i32
    return %arg0, %c0_i32 : i32, i32
  }
  func.func @transform_1(%arg0: i32) -> (i32, i32) {
    %c0_i32 = arith.constant 0 : i32
    %c0_i32_0 = arith.constant 0 : i32
    %c0_i32_1 = arith.constant 0 : i32
    return %c0_i32, %c0_i32_0 : i32, i32
  }
  func.func @transform_2(%arg0: i32) -> (i32, i32) {
    %c0_i32 = arith.constant 0 : i32
    %c0_i32_0 = arith.constant 0 : i32
    %c0_i32_1 = arith.constant 0 : i32
    return %c0_i32, %c0_i32_0 : i32, i32
  }
  func.func @transform_3(%arg0: i32) -> (i32, i32) {
    %c0_i32 = arith.constant 0 : i32
    %c0_i32_0 = arith.constant 0 : i32
    %c0_i32_1 = arith.constant 0 : i32
    return %c0_i32, %c0_i32_0 : i32, i32
  }
  func.func @transform_4(%arg0: i32) -> (i32, i32) {
    %c0_i32 = arith.constant 0 : i32
    %c0_i32_0 = arith.constant 0 : i32
    %c0_i32_1 = arith.constant 0 : i32
    return %c0_i32, %c0_i32_0 : i32, i32
  }
  func.func @transform_5(%arg0: i32) -> (i32, i32) {
    %c0_i32 = arith.constant 0 : i32
    %c0_i32_0 = arith.constant 0 : i32
    %c0_i32_1 = arith.constant 0 : i32
    return %c0_i32, %c0_i32_0 : i32, i32
  }
  func.func @transform_6(%arg0: i32) -> (i32, i32) {
    %c0_i32 = arith.constant 0 : i32
    %c0_i32_0 = arith.constant 0 : i32
    %c0_i32_1 = arith.constant 0 : i32
    return %c0_i32, %c0_i32_0 : i32, i32
  }
  func.func @transform_7(%arg0: i32) -> (i32, i32) {
    %c0_i32 = arith.constant 0 : i32
    %c0_i32_0 = arith.constant 0 : i32
    %c0_i32_1 = arith.constant 0 : i32
    return %c0_i32, %c0_i32_0 : i32, i32
  }
  func.func @transform_8(%arg0: i32) -> (i32, i32) {
    %c0_i32 = arith.constant 0 : i32
    %c0_i32_0 = arith.constant 0 : i32
    %c0_i32_1 = arith.constant 0 : i32
    return %c0_i32, %c0_i32_0 : i32, i32
  }
  func.func @transform_9(%arg0: i32) -> (i32, i32) {
    %c0_i32 = arith.constant 0 : i32
    %c0_i32_0 = arith.constant 0 : i32
    %c0_i32_1 = arith.constant 0 : i32
    return %c0_i32, %c0_i32_0 : i32, i32
  }
  func.func @transform_10(%arg0: i32) -> (i32, i32) {
    %c0_i32 = arith.constant 0 : i32
    %c0_i32_0 = arith.constant 0 : i32
    %c0_i32_1 = arith.constant 0 : i32
    return %c0_i32, %c0_i32_0 : i32, i32
  }
  func.func @transform_11(%arg0: i32) -> (i32, i32) {
    %c0_i32 = arith.constant 0 : i32
    %c0_i32_0 = arith.constant 0 : i32
    %c0_i32_1 = arith.constant 0 : i32
    return %c0_i32, %c0_i32_0 : i32, i32
  }
  func.func @transform_12(%arg0: i32) -> (i32, i32) {
    %c0_i32 = arith.constant 0 : i32
    %c0_i32_0 = arith.constant 0 : i32
    %c0_i32_1 = arith.constant 0 : i32
    return %c0_i32, %c0_i32_0 : i32, i32
  }
  func.func @transform_13(%arg0: i32) -> (i32, i32) {
    %c0_i32 = arith.constant 0 : i32
    %c0_i32_0 = arith.constant 0 : i32
    return %arg0, %c0_i32 : i32, i32
  }
}

</mosaic_0001>

<bundles_post_ra>
// kernel: tpu_custom_call.1
= control target key start
LH: loop header
LB: loop body
LE: loop exit
PB: predicated region body
PF: predicated region fallthrough
CT: control target
= control target key end

     0   :  { %s1192_s0 = inlined_call_operand.vmem [shape: f32[16,256], index: 0, kind: input, shape index: {}]   ;;  %s1193_s1 = inlined_call_operand.vmem [shape: bf16[256,64], index: 1, kind: input, shape index: {}]   ;;  %s1194_s2 = inlined_call_operand.vmem [shape: f32[1,64], index: 2, kind: input, shape index: {}]   ;;  %s1195_s3 = inlined_call_operand.vmem [shape: f32[8,64], index: 3, kind: input, shape index: {}]   ;;  %s1196_s4 = inlined_call_operand.vmem [shape: f32[1,8], index: 4, kind: input, shape index: {}]   ;;  %s1197_s5 = inlined_call_operand.vmem [shape: f32[2,8], index: 5, kind: input, shape index: {}]   ;;  %s1198_s6 = inlined_call_operand.vmem [shape: f32[1,2], index: 6, kind: input, shape index: {}]   ;;  %s1199_s7 = inlined_call_operand.vmem [shape: f32[2,8], index: 7, kind: input, shape index: {}]   ;;  %s1200_s8 = inlined_call_operand.vmem [shape: f32[1,8], index: 8, kind: input, shape index: {}]   ;;  %s1201_s9 = inlined_call_operand.vmem [shape: f32[8,64], index: 9, kind: input, shape index: {}]   ;;  %s1202_s10 = inlined_call_operand.vmem [shape: f32[1,64], index: 10, kind: input, shape index: {}]   ;;  %s1203_s11 = inlined_call_operand.vmem [shape: bf16[64,256], index: 11, kind: input, shape index: {}]   ;;  %s1204_s12 = inlined_call_operand.vmem [shape: f32[1,256], index: 12, kind: input, shape index: {}]   ;;  %s1205_s13 = inlined_call_operand.hbm [shape: f32[16,256], index: 13, kind: output, shape index: {}]  }
   0x1   :  { %v847_v0 = vld [vmem:[%s1193_s1 + $0x40] sm:$0xff]   ;;  %v849_v2 = vld [vmem:[%s1193_s1 + $0x48] sm:$0xff]   ;;  %v851_v4 = vld [vmem:[%s1193_s1 + $0x50] sm:$0xff]  }
   0x2   :  { %v848_v1 = vld [vmem:[%s1193_s1] sm:$0xff]   ;;  %794 = vmatprep.subr.bf16.mxu0 %v847_v0  ;;  %v850_v3 = vld [vmem:[%s1193_s1 + $0x8] sm:$0xff]   ;;  %v852_v5 = vld [vmem:[%s1193_s1 + $0x10] sm:$0xff]  }
   0x3   :  { %795 = vmatpush3.bf16.msra.mxu0 %v848_v1  ;;  %v853_v6 = vld [vmem:[%s1193_s1 + $0x58] sm:$0xff]   ;;  %v855_v8 = vld [vmem:[%s1193_s1 + $0x60] sm:$0xff]   ;;  %v857_v10 = vld [vmem:[%s1193_s1 + $0x68] sm:$0xff]  }
   0x4   :  { %796 = vmatprep.subr.bf16.mxu0 %v849_v2  ;;  %v854_v7 = vld [vmem:[%s1193_s1 + $0x18] sm:$0xff]   ;;  %v856_v9 = vld [vmem:[%s1193_s1 + $0x20] sm:$0xff]   ;;  %v47_v11 = vld [vmem:[%s1192_s0 + $0x8] sm:$0xff] }
   0x5   :  { %v49_v12 = vld [vmem:[%s1192_s0 + $0x18] sm:$0xff]  ;;  %v858_v13 = vld [vmem:[%s1193_s1 + $0x28] sm:$0xff]   ;;  %v859_v15 = vld [vmem:[%s1193_s1 + $0x70] sm:$0xff]  }
   0x6   :  { %v51_v14 = vpack.c.bf16 %v49_v12, %v47_v11 }
   0x7   :  { %797 = vmatpush3.bf16.msra.mxu0 %v850_v3 }
   0x8   :  { %798 = vmatprep.subr.bf16.mxu0 %v851_v4  ;;  %219 = vmatprep.mubr.bf16.mxu0 %v51_v14 }
   0xb   :  { %799 = vmatpush3.bf16.msra.mxu0 %v852_v5 }
   0xc   :  { %800 = vmatprep.subr.bf16.mxu0 %v853_v6 }
   0xf   :  { %801 = vmatpush3.bf16.msra.mxu0 %v854_v7 }
  0x10   :  { %802 = vmatprep.subr.bf16.mxu0 %v855_v8 }
  0x13   :  { %803 = vmatpush3.bf16.msra.mxu0 %v856_v9 }
  0x14   :  { %804 = vmatprep.subr.bf16.mxu0 %v857_v10 }
  0x15   :  { %18 = vsyncpa [#allocation3], 0  ;;  %v860_v16 = vld [vmem:[%s1193_s1 + $0x30] sm:$0xff]   ;;  %v861_v17 = vld [vmem:[%s1193_s1 + $0x78] sm:$0xff]   ;;  %vm239_vm0 = vcmask 523264   ;;  %vm337_vm1 = vcmask 7168  }
  0x16   :  { %v862_v18 = vld [vmem:[%s1193_s1 + $0x38] sm:$0xff]   ;;  %v46_v19 = vld [vmem:[%s1192_s0] sm:$0xff]  ;;  %v48_v20 = vld [vmem:[%s1192_s0 + $0x10] sm:$0xff]  ;;  %vm340_vm2 = vcmask 15360   ;;  %vm343_vm3 = vcmask 23552   ;;  %vm346_vm4 = vcmask 31744  }
  0x17   :  { %805 = vmatpush3.bf16.msra.mxu0 %v858_v13  ;;  %v50_v21 = vpack.c.bf16 %v48_v20, %v46_v19  ;;  %v744_v23 = vld [vmem:[%s1194_s2] ss:$0 sm:$0xff]  ;;  %v762_v32 = vld [vmem:[%s1195_s3 + $0x1] ss:$0 sm:$0xff]  ;;  %v763_v36 = vld [vmem:[%s1195_s3 + $0x2] ss:$0 sm:$0xff] }
  0x18   :  { %806 = vmatprep.subr.bf16.mxu0 %v859_v15  ;;  %v761_v33 = vld [vmem:[%s1195_s3] ss:$0 sm:$0xff]  ;;  %v764_v44 = vld [vmem:[%s1195_s3 + $0x3] ss:$0 sm:$0xff]  ;;  %v765_v49 = vld [vmem:[%s1195_s3 + $0x4] ss:$0 sm:$0xff] }
  0x19   :  { %v766_v54 = vld [vmem:[%s1195_s3 + $0x5] ss:$0 sm:$0xff]  ;;  %v767_v63 = vld [vmem:[%s1195_s3 + $0x6] ss:$0 sm:$0xff]  ;;  %v768_v4 = vld [vmem:[%s1195_s3 + $0x7] ss:$0 sm:$0xff] }
  0x1a   :  { %vm349_vm5 = vcmask 39936   ;;  %vm352_vm6 = vcmask 48128   ;;  %vm355_vm7 = vcmask 56320   ;;  %vm378_vm8 = vcmask 64512   ;;  %s915_s24 = smov [#allocation2]  }
  0x1b   :  { %807 = vmatpush3.bf16.msra.mxu0 %v860_v16  ;;  %s733_s25 = sshll.u32 %s915_s24, 4  ;;  %s734_s25 = int_to_ptr.vmem [resolvable:$true] %s733_s25 }
  0x1c   :  { %808 = vmatprep.subr.bf16.mxu0 %v861_v17  ;;  %s883_s26 = scalar_lea.vmem %s734_s25, 512  ;;  %p888_p1 = scmp.lt.s32.totalorder %s734_s25, %s734_s25 }
  0x1d   :  { %p884_p0 = scmp.ne.s32.totalorder %s734_s25, %s883_s26  ;;  %p889_p2 = scmp.lt.s32.totalorder %s883_s26, %s883_s26 }
  0x1f   :  { %809 = vmatpush3.bf16.msra.mxu0 %v862_v18  ;;  %p890_p3 = por %p889_p2, %p888_p1 }
  0x21   :  { %p891_p4 = pnand %p890_p3, %p884_p0 }
  0x22   :  { %220 = vmatmul.mubr.bf16.vlgmr.msra.gmra.mrb[0].mxu0 %v50_v21 }
  0xf5   :  { %v810_v22 = vpop.f32.mrb[0].mxu0 }
  0xf6   :  { %v811_v24 = vpop.f32.mrb[1].mxu0 }
  0xf7   :  { %v812_v25 = vadd.f32 %v811_v24, %v810_v22  ;;  %v813_v26 = vpop.f32.mrb[2].mxu0 }
  0xf8   :  { %v814_v27 = vpop.f32.mrb[3].mxu0 }
  0xf9   :  { %v222_v28 = vadd.f32 %v812_v25, %v744_v23  ;;  %v815_v29 = vadd.f32 %v814_v27, %v813_v26 }
  0xfb   :  { %v228_v30 = vmul.f32 0.01, %v222_v28  ;;  %v225_v31 = vadd.f32 %v815_v29, %v744_v23 }
  0xfd   :  { %v230_v34 = vmax.f32 %v222_v28, %v228_v30  ;;  %v229_v35 = vmul.f32 0.01, %v225_v31 }
  0xff   :  { %v231_v37 = vmax.f32 %v225_v31, %v229_v35  ;;  %v251_v38 = vmul.f32 %v762_v32, %v230_v34  ;;  %v237_v39 = vmul.f32 %v761_v33, %v230_v34  ;;  %v264_v43 = vmul.f32 %v763_v36, %v230_v34  ;;  %v769_v35 = vld [vmem:[%s1196_s4] ss:$0 sm:$0xff] }
 0x100   :  { %v277_v48 = vmul.f32 %v764_v44, %v230_v34  ;;  %v290_v53 = vmul.f32 %v765_v49, %v230_v34  ;;  %v303_v58 = vmul.f32 %v766_v54, %v230_v34  ;;  %v316_v3 = vmul.f32 %v767_v63, %v230_v34 }
 0x101   :  { %v253_v40 = vsel %vm239_vm0, %v251_v38, 0.0  ;;  %v240_v41 = vsel %vm239_vm0, %v237_v39, 0.0  ;;  %v252_v42 = vmul.f32 %v762_v32, %v231_v37  ;;  %v266_v46 = vsel %vm239_vm0, %v264_v43, 0.0 }
 0x102   :  { %254 = vadd.xlane.f32.xlu1 %v253_v40  ;;  %241 = vadd.xlane.f32.xlu0 %v240_v41  ;;  %v265_v47 = vmul.f32 %v763_v36, %v231_v37  ;;  %v279_v51 = vsel %vm239_vm0, %v277_v48, 0.0  ;;  %v278_v52 = vmul.f32 %v764_v44, %v231_v37  ;;  %v292_v56 = vsel %vm239_vm0, %v290_v53, 0.0 }
 0x103   :  { %v256_v45 = vsel %vm239_vm0, %v252_v42, 0.0  ;;  %v291_v57 = vmul.f32 %v765_v49, %v231_v37  ;;  %v305_v60 = vsel %vm239_vm0, %v303_v58, 0.0  ;;  %v304_v61 = vmul.f32 %v766_v54, %v231_v37  ;;  %v771_v49 = vld [vmem:[%s1197_s5 + $0x1] ss:$0 sm:$0xff] }
 0x104   :  { %v269_v50 = vsel %vm239_vm0, %v265_v47, 0.0  ;;  %v282_v55 = vsel %vm239_vm0, %v278_v52, 0.0  ;;  %v238_v62 = vmul.f32 %v761_v33, %v231_v37  ;;  %v317_v2 = vmul.f32 %v767_v63, %v231_v37 }
 0x105   :  { %v295_v59 = vsel %vm239_vm0, %v291_v57, 0.0  ;;  %v308_v0 = vsel %vm239_vm0, %v304_v61, 0.0  ;;  %v318_v6 = vsel %vm239_vm0, %v316_v3, 0.0  ;;  %v330_v7 = vmul.f32 %v768_v4, %v231_v37 }
 0x106   :  { %257 = vadd.xlane.f32.xlu1 %v256_v45  ;;  %267 = vadd.xlane.f32.xlu0 %v266_v46  ;;  %v243_v1 = vsel %vm239_vm0, %v238_v62, 0.0  ;;  %v321_v5 = vsel %vm239_vm0, %v317_v2, 0.0  ;;  %v329_v8 = vmul.f32 %v768_v4, %v230_v34  ;;  %v770_v46 = vld [vmem:[%s1197_s5] ss:$0 sm:$0xff]  ;;  %v907_v58 = vmov 1  }
 0x107   :  { %v334_v9 = vsel %vm239_vm0, %v330_v7, 0.0  ;;  %828 = vset.pattern.permute.xlu1 %v907_v58  ;;  %v772_v62 = vld [vmem:[%s1198_s6] ss:$0 sm:$0xff] }
 0x108   :  { %v331_v10 = vsel %vm239_vm0, %v329_v8, 0.0 }
 0x10a   :  { %270 = vadd.xlane.f32.xlu1 %v269_v50  ;;  %280 = vadd.xlane.f32.xlu0 %v279_v51 }
 0x10e   :  { %283 = vadd.xlane.f32.xlu1 %v282_v55  ;;  %293 = vadd.xlane.f32.xlu0 %v292_v56 }
 0x112   :  { %296 = vadd.xlane.f32.xlu1 %v295_v59  ;;  %306 = vadd.xlane.f32.xlu0 %v305_v60  ;;  %v908_v59 = vmov 0  }
 0x113   :  { %827 = vset.pattern.permute.xlu0 %v908_v59  ;;  %713 = vmatprep.mubr.bf16.mxu1 %v908_v59 }
 0x116   :  { %309 = vadd.xlane.f32.xlu1 %v308_v0  ;;  %244 = vadd.xlane.f32.xlu0 %v243_v1 }
 0x11a   :  { %322 = vadd.xlane.f32.xlu1 %v321_v5  ;;  %319 = vadd.xlane.f32.xlu0 %v318_v6 }
 0x11e   :  { %335 = vadd.xlane.f32.xlu1 %v334_v9  ;;  %332 = vadd.xlane.f32.xlu0 %v331_v10 }
 0x18f   :  { %v255_v11 = vpop.xlane.xlu1 %254  ;;  %v242_v12 = vpop.xlane.xlu0 %241 }
 0x190   :  { %v338_v25 = vsel %vm337_vm1, %v242_v12, %v255_v11 }
 0x193   :  { %v258_v13 = vpop.xlane.xlu1 %257  ;;  %v268_v14 = vpop.xlane.xlu0 %267 }
 0x194   :  { %v341_v27 = vsel %vm340_vm2, %v338_v25, %v268_v14 }
 0x197   :  { %v271_v15 = vpop.xlane.xlu1 %270  ;;  %v281_v16 = vpop.xlane.xlu0 %280 }
 0x198   :  { %v344_v31 = vsel %vm343_vm3, %v341_v27, %v281_v16  ;;  %v774_v16 = vld [vmem:[%s1199_s7 + $0x1] ss:$0 sm:$0xff] }
 0x19b   :  { %v284_v17 = vpop.xlane.xlu1 %283  ;;  %v294_v18 = vpop.xlane.xlu0 %293 }
 0x19c   :  { %v347_v33 = vsel %vm346_vm4, %v344_v31, %v294_v18 }
 0x19f   :  { %v297_v19 = vpop.xlane.xlu1 %296  ;;  %v307_v20 = vpop.xlane.xlu0 %306 }
 0x1a0   :  { %v350_v34 = vsel %vm349_vm5, %v347_v33, %v307_v20  ;;  %v910_v33 = vmov 2  }
 0x1a3   :  { %v310_v21 = vpop.xlane.xlu1 %309  ;;  %v245_v22 = vpop.xlane.xlu0 %244 }
 0x1a4   :  { %v339_v23 = vsel %vm337_vm1, %v245_v22, %v258_v13  ;;  %v775_v22 = vld [vmem:[%s1200_s8] ss:$0 sm:$0xff] }
 0x1a5   :  { %v342_v24 = vsel %vm340_vm2, %v339_v23, %v271_v15  ;;  %v909_v15 = vmov 4  }
 0x1a6   :  { %v345_v26 = vsel %vm343_vm3, %v342_v24, %v284_v17  ;;  %v773_v17 = vld [vmem:[%s1199_s7] ss:$0 sm:$0xff] }
 0x1a7   :  { %v323_v28 = vpop.xlane.xlu1 %322  ;;  %v348_v29 = vsel %vm346_vm4, %v345_v26, %v297_v19  ;;  %v320_v30 = vpop.xlane.xlu0 %319 }
 0x1a8   :  { %v351_v32 = vsel %vm349_vm5, %v348_v29, %v310_v21  ;;  %v353_v37 = vsel %vm352_vm6, %v350_v34, %v320_v30 }
 0x1a9   :  { %v354_v36 = vsel %vm352_vm6, %v351_v32, %v323_v28 }
 0x1ab   :  { %v336_v38 = vpop.xlane.xlu1 %335  ;;  %v333_v39 = vpop.xlane.xlu0 %332 }
 0x1ac   :  { %v357_v40 = vsel %vm355_vm7, %v354_v36, %v336_v38  ;;  %v356_v41 = vsel %vm355_vm7, %v353_v37, %v333_v39  ;;  %v911_v36 = vmov 5   ;;  %v912_v37 = vmov 3  }
 0x1ad   :  { %v366_v42 = vadd.f32 %v769_v35, %v357_v40  ;;  %v365_v43 = vadd.f32 %v769_v35, %v356_v41  ;;  %v913_v38 = vmov 7   ;;  %v914_v39 = vmov 6   ;;  %v863_v40 = vld [vmem:[%s1203_s11 + $0x4] ss:$8 sps:$4 sm:$0xff]   ;;  %v865_v41 = vld [vmem:[%s1203_s11] ss:$8 sps:$4 sm:$0xff]  }
 0x1ae   :  { %681 = vmatprep.subr.bf16.mxu1 %v863_v40 }
 0x1af   :  { %v368_v44 = vmul.f32 0.01, %v366_v42  ;;  %v367_v45 = vmul.f32 0.01, %v365_v43  ;;  %682 = vmatpush1.bf16.msra.mxu1 %v865_v41 }
 0x1b1   :  { %v370_v47 = vmax.f32 %v366_v42, %v368_v44  ;;  %v369_v48 = vmax.f32 %v365_v43, %v367_v45  ;;  %v866_v42 = vld [vmem:[%s1203_s11 + $0x14] ss:$8 sps:$4 sm:$0xff]   ;;  %v868_v43 = vld [vmem:[%s1203_s11 + $0x10] ss:$8 sps:$4 sm:$0xff]   ;;  %v869_v44 = vld [vmem:[%s1203_s11 + $0x24] ss:$8 sps:$4 sm:$0xff]  }
 0x1b2   :  { %683 = vmatprep.subr.bf16.mxu1 %v866_v42  ;;  %v871_v45 = vld [vmem:[%s1203_s11 + $0x20] ss:$8 sps:$4 sm:$0xff]  }
 0x1b3   :  { %v377_v50 = vmul.f32 %v770_v46, %v370_v47  ;;  %v376_v51 = vmul.f32 %v770_v46, %v369_v48  ;;  %v391_v54 = vmul.f32 %v771_v49, %v370_v47  ;;  %v390_v55 = vmul.f32 %v771_v49, %v369_v48  ;;  %684 = vmatpush1.bf16.msra.mxu1 %v868_v43  ;;  %v872_v46 = vld [vmem:[%s1203_s11 + $0x34] ss:$8 sps:$4 sm:$0xff]   ;;  %v874_v47 = vld [vmem:[%s1203_s11 + $0x30] ss:$8 sps:$4 sm:$0xff]  }
 0x1b4   :  { %685 = vmatprep.subr.bf16.mxu1 %v869_v44 }
 0x1b5   :  { %v382_v52 = vsel %vm378_vm8, %v377_v50, 0.0  ;;  %v379_v53 = vsel %vm378_vm8, %v376_v51, 0.0  ;;  %v395_v56 = vsel %vm378_vm8, %v391_v54, 0.0  ;;  %v392_v57 = vsel %vm378_vm8, %v390_v55, 0.0  ;;  %v776_v54 = vld [vmem:[%s1201_s9] ss:$0 sm:$0xff] }
 0x1b6   :  { %383 = vadd.xlane.f32.xlu1 %v382_v52  ;;  %380 = vadd.xlane.f32.xlu0 %v379_v53  ;;  %v778_v55 = vld [vmem:[%s1201_s9 + $0x1] ss:$0 sm:$0xff] }
 0x1b7   :  { %686 = vmatpush1.bf16.msra.mxu1 %v871_v45 }
 0x1b8   :  { %687 = vmatprep.subr.bf16.mxu1 %v872_v46  ;;  %v628_v46 = vlaneseq }
 0x1ba   :  { %396 = vadd.xlane.f32.xlu1 %v395_v56  ;;  %393 = vadd.xlane.f32.xlu0 %v392_v57 }
 0x1bb   :  { %688 = vmatpush1.bf16.msra.mxu1 %v874_v47  ;;  %v629_v47 = vshrl.u32 %v628_v46, 7 }
 0x243   :  { %v384_v60 = vpop.xlane.xlu1 %383  ;;  %v381_v61 = vpop.xlane.xlu0 %380 }
 0x247   :  { %v397_v63 = vpop.xlane.xlu1 %396  ;;  %v394_v0 = vpop.xlane.xlu0 %393 }
 0x248   :  { %v399_v1 = vsel %vm337_vm1, %v384_v60, %v397_v63  ;;  %v398_v2 = vsel %vm337_vm1, %v381_v61, %v394_v0  ;;  %v780_v63 = vld [vmem:[%s1201_s9 + $0x3] ss:$0 sm:$0xff] }
 0x249   :  { %v408_v3 = vadd.f32 %v772_v62, %v399_v1  ;;  %v407_v4 = vadd.f32 %v772_v62, %v398_v2 }
 0x24b   :  { %v410_v5 = vsub.f32 0.0, %v408_v3  ;;  %v409_v6 = vsub.f32 0.0, %v407_v4 }
 0x24d   :  { %v413_v7 = vmul.f32 1.442695, %v410_v5  ;;  %v411_v8 = vmul.f32 1.442695, %v409_v6 }
 0x24f   :  { %875 = vpow2.f32 %v411_v8 }
 0x250   :  { %877 = vpow2.f32 %v413_v7 }
 0x259   :  { %v876_v9 = vpop.eup %875 }
 0x25a   :  { %v878_v10 = vpop.eup %877  ;;  %v415_v11 = vadd.f32 1.0, %v876_v9 }
 0x25b   :  { %v416_v12 = vadd.f32 1.0, %v878_v10  ;;  %v781_v10 = vld [vmem:[%s1201_s9 + $0x4] ss:$0 sm:$0xff] }
 0x25c   :  { %879 = vrcp.f32 %v415_v11 }
 0x25d   :  { %881 = vrcp.f32 %v416_v12 }
 0x266   :  { %v880_v13 = vpop.eup %879 }
 0x267   :  { %440 = vperm.xlu1 %828, %v880_v13   ;;  %424 = vperm.xlu0 %827, %v880_v13   ;;  %v882_v14 = vpop.eup %881 }
 0x26b   :  { %829 = vset.pattern.permute.xlu1 %v908_v59  ;;  %835 = vset.pattern.permute.xlu0 %v909_v15 }
 0x26c   :  { %429 = vperm.xlu1 %829, %v882_v14  }
 0x270   :  { %830 = vset.pattern.permute.xlu1 %v907_v58 }
 0x271   :  { %444 = vperm.xlu1 %830, %v882_v14  }
 0x275   :  { %831 = vset.pattern.permute.xlu1 %v908_v59 }
 0x2e6   :  { %v441_v18 = vpop.permute.xlu1 %440  ;;  %v425_v19 = vpop.permute.xlu0 %424 }
 0x2e7   :  { %v451_v20 = vmul.f32 %v774_v16, %v441_v18  ;;  %v436_v21 = vmul.f32 %v773_v17, %v425_v19  ;;  %v783_v19 = vld [vmem:[%s1201_s9 + $0x6] ss:$0 sm:$0xff] }
 0x2e9   :  { %v453_v23 = vadd.f32 %v451_v20, %v436_v21 }
 0x2eb   :  { %v462_v24 = vadd.f32 %v775_v22, %v453_v23  ;;  %v430_v25 = vpop.permute.xlu1 %429 }
 0x2ec   :  { %v437_v29 = vmul.f32 %v773_v17, %v430_v25  ;;  %v782_v17 = vld [vmem:[%s1201_s9 + $0x5] ss:$0 sm:$0xff] }
 0x2ed   :  { %v464_v26 = vmul.f32 0.01, %v462_v24 }
 0x2ef   :  { %v466_v27 = vmax.f32 %v462_v24, %v464_v26 }
 0x2f0   :  { %v445_v28 = vpop.permute.xlu1 %444 }
 0x2f1   :  { %v452_v30 = vmul.f32 %v774_v16, %v445_v28  ;;  %547 = vperm.xlu0 %835, %v466_v27   ;;  %472 = vperm.xlu1 %831, %v466_v27   ;;  %v784_v28 = vld [vmem:[%s1201_s9 + $0x7] ss:$0 sm:$0xff] }
 0x2f3   :  { %v454_v31 = vadd.f32 %v452_v30, %v437_v29 }
 0x2f5   :  { %v463_v32 = vadd.f32 %v775_v22, %v454_v31  ;;  %832 = vset.pattern.permute.xlu1 %v907_v58  ;;  %840 = vset.pattern.permute.xlu0 %v910_v33 }
 0x2f6   :  { %496 = vperm.xlu1 %832, %v466_v27  }
 0x2f7   :  { %v465_v34 = vmul.f32 0.01, %v463_v32 }
 0x2f9   :  { %v467_v35 = vmax.f32 %v463_v32, %v465_v34 }
 0x2fa   :  { %833 = vset.pattern.permute.xlu1 %v910_v33 }
 0x2fb   :  { %517 = vperm.xlu0 %840, %v467_v35   ;;  %513 = vperm.xlu1 %833, %v466_v27  }
 0x2ff   :  { %843 = vset.pattern.permute.xlu0 %v911_v36  ;;  %834 = vset.pattern.permute.xlu1 %v912_v37 }
 0x300   :  { %568 = vperm.xlu0 %843, %v467_v35   ;;  %530 = vperm.xlu1 %834, %v466_v27  }
 0x304   :  { %845 = vset.pattern.permute.xlu0 %v913_v38  ;;  %836 = vset.pattern.permute.xlu1 %v911_v36 }
 0x305   :  { %598 = vperm.xlu0 %845, %v466_v27   ;;  %564 = vperm.xlu1 %836, %v466_v27  }
 0x309   :  { %837 = vset.pattern.permute.xlu1 %v914_v39 }
 0x30a   :  { %581 = vperm.xlu1 %837, %v466_v27  }
 0x30e   :  { %838 = vset.pattern.permute.xlu1 %v908_v59  ;;  %v779_v59 = vld [vmem:[%s1201_s9 + $0x2] ss:$0 sm:$0xff] }
 0x30f   :  { %477 = vperm.xlu1 %838, %v467_v35  }
 0x313   :  { %839 = vset.pattern.permute.xlu1 %v907_v58  ;;  %v777_v58 = vld [vmem:[%s1202_s10] ss:$0 sm:$0xff] }
 0x314   :  { %500 = vperm.xlu1 %839, %v467_v35  }
 0x318   :  { %841 = vset.pattern.permute.xlu1 %v912_v37 }
 0x319   :  { %534 = vperm.xlu1 %841, %v467_v35  }
 0x31d   :  { %842 = vset.pattern.permute.xlu1 %v909_v15 }
 0x31e   :  { %551 = vperm.xlu1 %842, %v467_v35  }
 0x322   :  { %844 = vset.pattern.permute.xlu1 %v914_v39 }
 0x323   :  { %585 = vperm.xlu1 %844, %v467_v35  }
 0x327   :  { %846 = vset.pattern.permute.xlu1 %v913_v38 }
 0x328   :  { %602 = vperm.xlu1 %846, %v467_v35  }
 0x370   :  { %v473_v48 = vpop.permute.xlu1 %472  ;;  %v548_v62 = vpop.permute.xlu0 %547 }
 0x371   :  { %v484_v56 = vmul.f32 %v776_v54, %v473_v48  ;;  %v558_v14 = vmul.f32 %v781_v10, %v548_v62  ;;  %v630_v48 = vsub.s32 0, %v629_v47 }
 0x373   :  { %v492_v0 = vadd.f32 %v777_v58, %v484_v56 }
 0x375   :  { %v497_v49 = vpop.permute.xlu1 %496 }
 0x376   :  { %v507_v60 = vmul.f32 %v778_v55, %v497_v49  ;;  %v626_v49 = vld [vmem:[%s1204_s12] sm:$0x3] }
 0x378   :  { %v509_v3 = vadd.f32 %v507_v60, %v492_v0 }
 0x37a   :  { %v514_v50 = vpop.permute.xlu1 %513  ;;  %v518_v7 = vpop.permute.xlu0 %517 }
 0x37b   :  { %v524_v1 = vmul.f32 %v779_v59, %v514_v50  ;;  %v525_v11 = vmul.f32 %v779_v59, %v518_v7  ;;  %v634_v50 = vsub.s32 1, %v629_v47 }
 0x37d   :  { %v526_v8 = vadd.f32 %v524_v1, %v509_v3 }
 0x37f   :  { %v531_v51 = vpop.permute.xlu1 %530  ;;  %v569_v18 = vpop.permute.xlu0 %568 }
 0x380   :  { %v541_v4 = vmul.f32 %v780_v63, %v531_v51  ;;  %v576_v30 = vmul.f32 %v782_v17, %v569_v18  ;;  %v631_v51 = vrot.slane %v626_v49, %v630_v48 }
 0x382   :  { %v543_v12 = vadd.f32 %v541_v4, %v526_v8 }
 0x384   :  { %v565_v52 = vpop.permute.xlu1 %564  ;;  %v560_v20 = vadd.f32 %v558_v14, %v543_v12  ;;  %v599_v29 = vpop.permute.xlu0 %598 }
 0x385   :  { %v575_v21 = vmul.f32 %v782_v17, %v565_v52  ;;  %v609_v33 = vmul.f32 %v784_v28, %v599_v29  ;;  %v635_v52 = vrot.slane %v626_v49, %v634_v50 }
 0x387   :  { %v577_v26 = vadd.f32 %v575_v21, %v560_v20 }
 0x389   :  { %v582_v53 = vpop.permute.xlu1 %581 }
 0x38a   :  { %v592_v23 = vmul.f32 %v783_v19, %v582_v53 }
 0x38c   :  { %v594_v31 = vadd.f32 %v592_v23, %v577_v26 }
 0x38e   :  { %v478_v57 = vpop.permute.xlu1 %477  ;;  %v611_v36 = vadd.f32 %v609_v33, %v594_v31 }
 0x38f   :  { %v485_v61 = vmul.f32 %v776_v54, %v478_v57 }
 0x390   :  { %v613_v40 = vmul.f32 0.01, %v611_v36 }
 0x391   :  { %v493_v5 = vadd.f32 %v777_v58, %v485_v61 }
 0x392   :  { %v615_v43 = vmax.f32 %v611_v36, %v613_v40 }
 0x393   :  { %v501_v2 = vpop.permute.xlu1 %500 }
 0x394   :  { %v508_v6 = vmul.f32 %v778_v55, %v501_v2 }
 0x396   :  { %v510_v9 = vadd.f32 %v508_v6, %v493_v5 }
 0x398   :  { %v535_v13 = vpop.permute.xlu1 %534  ;;  %v527_v15 = vadd.f32 %v525_v11, %v510_v9 }
 0x399   :  { %v542_v16 = vmul.f32 %v780_v63, %v535_v13 }
 0x39b   :  { %v544_v24 = vadd.f32 %v542_v16, %v527_v15 }
 0x39d   :  { %v552_v22 = vpop.permute.xlu1 %551 }
 0x39e   :  { %v559_v25 = vmul.f32 %v781_v10, %v552_v22 }
 0x3a0   :  { %v561_v27 = vadd.f32 %v559_v25, %v544_v24 }
 0x3a2   :  { %v586_v32 = vpop.permute.xlu1 %585  ;;  %v578_v34 = vadd.f32 %v576_v30, %v561_v27 }
 0x3a3   :  { %v593_v35 = vmul.f32 %v783_v19, %v586_v32 }
 0x3a5   :  { %v595_v38 = vadd.f32 %v593_v35, %v578_v34 }
 0x3a7   :  { %v603_v37 = vpop.permute.xlu1 %602 }
 0x3a8   :  { %v610_v39 = vmul.f32 %v784_v28, %v603_v37 }
 0x3aa   :  { %v612_v41 = vadd.f32 %v610_v39, %v595_v38 }
 0x3ac   :  { %v614_v42 = vmul.f32 0.01, %v612_v41 }
 0x3ae   :  { %v616_v44 = vmax.f32 %v612_v41, %v614_v42 }
 0x3b0   :  { %v617_v45 = vpack.c.bf16 %v616_v44, %v615_v43 }
 0x3b2   :  { %793 = vmatmul.mubr.msk.bf16.vlgmr.msra.gmra.mrb[0].mxu1 %vm239_vm0, %v617_v45 }
 0x485   :  { %v715_v53 = vpop.f32.mrb[0].mxu1 }
 0x486   :  { %v716_v54 = vadd.f32 %v715_v53, %v631_v51  ;;  %v717_v55 = vpop.f32.mrb[1].mxu1 }
 0x487   :  { %v718_v56 = vadd.f32 %v717_v55, %v635_v52  ;;  %v719_v57 = vpop.f32.mrb[2].mxu1 }
 0x488   :  { %724 = vst [vmem:[#allocation2] sm:$0xff] %v716_v54  ;;  %v720_v58 = vadd.f32 %v719_v57, %v631_v51  ;;  %v721_v59 = vpop.f32.mrb[3].mxu1 }
 0x489   :  { %725 = vst [vmem:[#allocation2 + $0x8] sm:$0xff] %v718_v56  ;;  %v722_v60 = vadd.f32 %v721_v59, %v635_v52 }
 0x48a   :  { %726 = vst [vmem:[#allocation2 + $0x10] sm:$0xff] %v720_v58 }
 0x48b   :  { %727 = vst [vmem:[#allocation2 + $0x18] sm:$0xff] %v722_v60 }
 0x48c   :  { %894 = shalt.err (!%p891_p4)
}
 0x48d   :  { %s895_s28 = scalar_lea.hbm %s1205_s13, 512 }
 0x48e   :  { %p896_p5 = scmp.ne.s32.totalorder %s1205_s13, %s895_s28  ;;  %p899_p6 = scmp.lt.u32.totalorder %s895_s28, %s1205_s13 }
 0x490   :  { %p901_p7 = pnand %p899_p6, %p896_p5 }
 0x492   :  { %904 = shalt.err (!%p901_p7)
}
 0x493   :  { %s916_s15 = smov 256   ;;  %s917_s1 = smov 16  }
 0x494   :  { %739 = dma.vmem_to_hbm [thread:$0]  %s734_s25, 512, %s1205_s13, [#allocation3], %s916_s15, %s916_s15, %s917_s1  }
 0x495   :  { %905 = dma.done.wait [#allocation3], 512  }
 0x496   :  { %906 = vsyncadd [#allocation3], 4294966784 }
 0x497   :  { %743 = vsyncpa [#allocation3], 1 }

</bundles_post_ra>
